<compile_context>
chip_gen: v5e
topology: v5e:2x2
jax: 0.10.0
libtpu: 0.0.40
codegen_flags: <defaults>
</compile_context>

<pallas_src>
import jax
import jax.numpy as jnp
from jax.experimental import pallas as pl
from jax.experimental.pallas import tpu as pltpu

# Model constants (from the PyTorch module)
NUM_VISIBLE = 3          # number_of_visible_layers
NUM_HIDDEN = 2           # number_of_hidden_layers
K_STEPS = 5              # trajectory_length

SUB = 8                  # sublane tile
LANE = 128               # lane tile

N_H_DRAWS = 1 + K_STEPS // 2           # hidden samples: h0 + steps 1,3  -> 3
N_V_DRAWS = (K_STEPS + 1) // 2         # visible samples: steps 0,2,4    -> 3

# Packed (8, 128) tile layout (all other entries are EXACTLY zero):
#   [0:V,        0:H]           W
#   [BH_ROW,     0:H]           b_h
#   [0:V,        BV_LANE]       b_v
#   [0:V,        V0_LANE]       v0 (visible example)
#   [UH_ROW0+s,  0:H]           uniforms for hidden sample s   (s = 0..2)
#   [0:V,        UV_LANE0+t]    uniforms for visible sample t  (t = 0..2)
BV_LANE = 8
V0_LANE = 9
UV_LANE0 = 16
UH_ROW0 = 3
BH_ROW = 7

assert NUM_VISIBLE <= UH_ROW0
assert UH_ROW0 + N_H_DRAWS <= BH_ROW
assert NUM_HIDDEN <= BV_LANE
assert UV_LANE0 + N_V_DRAWS <= LANE


def rbm_kernel(p_ref, out_ref):
    p = p_ref[...]                                        # (8, 128) f32

    def pre_hidden(v_scalars):
        # pre_h[j] = sum_i v_i * W[i, j]  -> (1, LANE); only lanes < H consumed
        acc = v_scalars[0] * p[0:1, :]
        for i in range(1, NUM_VISIBLE):
            acc = acc + v_scalars[i] * p[i:i + 1, :]
        return acc

    def pre_visible(h_scalars):
        # pre_v[i] = sum_j W[i, j] * h_j  -> (SUB, 1); only rows < V consumed
        acc = p[:, 0:1] * h_scalars[0]
        for j in range(1, NUM_HIDDEN):
            acc = acc + p[:, j:j + 1] * h_scalars[j]
        return acc

    def sample_h(v_scalars, s):
        pre = pre_hidden(v_scalars)
        prob = jax.nn.sigmoid(p[BH_ROW:BH_ROW + 1, :] + pre)
        row = UH_ROW0 + s
        h = [(prob[0:1, j:j + 1] > p[row:row + 1, j:j + 1]).astype(jnp.float32)
             for j in range(NUM_HIDDEN)]
        return h, pre

    def sample_v(h_scalars, t):
        pre = pre_visible(h_scalars)
        prob = jax.nn.sigmoid(p[:, BV_LANE:BV_LANE + 1] + pre)
        lane = UV_LANE0 + t
        v = [(prob[i:i + 1, 0:1] > p[i:i + 1, lane:lane + 1]).astype(jnp.float32)
             for i in range(NUM_VISIBLE)]
        return v, pre

    def score_vh(v_scalars, h_scalars, t3):
        # score = -energy = sum(v*b_v) + sum(h*b_h) + (v^T W) h
        s = t3
        for i in range(NUM_VISIBLE):
            s = s + v_scalars[i] * p[i:i + 1, BV_LANE:BV_LANE + 1]
        for j in range(NUM_HIDDEN):
            s = s + h_scalars[j] * p[BH_ROW:BH_ROW + 1, j:j + 1]
        return s                                           # (1, 1)

    # ---- positive phase: sample h0 | v0, score(v0, h0) ----
    v = [p[i:i + 1, V0_LANE:V0_LANE + 1] for i in range(NUM_VISIBLE)]
    h, pre_h = sample_h(v, 0)
    t3 = h[0] * pre_h[0:1, 0:1]
    for j in range(1, NUM_HIDDEN):
        t3 = t3 + h[j] * pre_h[0:1, j:j + 1]
    log_prob_positive = score_vh(v, h, t3)

    # ---- CD-k Gibbs chain (K static -> fully unrolled): v, h, v, h, v ----
    pre_v = None
    v_draw, h_draw = 0, 1
    sample_visible = True
    for _ in range(K_STEPS):
        if sample_visible:
            v, pre_v = sample_v(h, v_draw)
            v_draw += 1
            sample_visible = False
        else:
            h, pre_h = sample_h(v, h_draw)
            h_draw += 1
            sample_visible = True

    # ---- negative phase: reuse the last pre-activation for (v^T W) h ----
    if not sample_visible:      # last step sampled v  ->  t3 = sum_i v_i (W h)_i
        t3 = v[0] * pre_v[0:1, 0:1]
        for i in range(1, NUM_VISIBLE):
            t3 = t3 + v[i] * pre_v[i:i + 1, 0:1]
    else:                       # last step sampled h  ->  t3 = sum_j h_j (v^T W)_j
        t3 = h[0] * pre_h[0:1, 0:1]
        for j in range(1, NUM_HIDDEN):
            t3 = t3 + h[j] * pre_h[0:1, j:j + 1]
    log_prob_negative = score_vh(v, h, t3)

    result = log_prob_positive - log_prob_negative         # (1, 1)
    # Lane-dense full store (avoids a masked (1,1) partial store).
    out_ref[...] = jnp.broadcast_to(result, (1, LANE))


@jax.jit
def rbm_forward(visible_example, weights_vh, biases_v, biases_h, key):
    """visible_example (V,), weights_vh (V,H), biases_v (V,1), biases_h (H,1)."""
    V, H = weights_vh.shape
    f32 = jnp.float32

    # TODO(synk): torch.distributions.Uniform(0,1) sampler is replaced by
    # host-side jax.random.uniform draws (same distribution, different stream).
    k_h, k_v = jax.random.split(key)
    u_h = jax.random.uniform(k_h, (N_H_DRAWS, H), dtype=f32)
    u_v = jax.random.uniform(k_v, (V, N_V_DRAWS), dtype=f32)

    # Single packed tile -> single input DMA.
    p = jnp.zeros((SUB, LANE), f32)
    p = p.at[:V, :H].set(weights_vh.astype(f32))
    p = p.at[BH_ROW, :H].set(biases_h.reshape(-1).astype(f32))
    p = p.at[:V, BV_LANE].set(biases_v.reshape(-1).astype(f32))
    p = p.at[:V, V0_LANE].set(visible_example.reshape(-1).astype(f32))
    p = p.at[UH_ROW0:UH_ROW0 + N_H_DRAWS, :H].set(u_h)
    p = p.at[:V, UV_LANE0:UV_LANE0 + N_V_DRAWS].set(u_v)

    out = pl.pallas_call(
        rbm_kernel,
        out_shape=jax.ShapeDtypeStruct((1, LANE), f32),
        in_specs=[pl.BlockSpec(memory_space=pltpu.MemorySpace.VMEM)],
        out_specs=pl.BlockSpec(memory_space=pltpu.MemorySpace.VMEM),
    )(p)
    return out[0, 0]


if __name__ == "__main__":
    key = jax.random.PRNGKey(0)
    k_v, k_w, k_bv, k_bh, k_u = jax.random.split(key, 5)

    # The PyTorch module initializes its parameters to zeros (forward would be
    # trivially 0); use small deterministic random values so the kernel
    # exercises real compute.  Shapes match the module exactly.
    visible_example = jax.random.bernoulli(
        k_v, 0.5, (NUM_VISIBLE,)).astype(jnp.float32)                 # (3,)
    weights_vh = 0.1 * jax.random.normal(
        k_w, (NUM_VISIBLE, NUM_HIDDEN), dtype=jnp.float32)            # (3, 2)
    biases_v = 0.1 * jax.random.normal(
        k_bv, (NUM_VISIBLE, 1), dtype=jnp.float32)                    # (3, 1)
    biases_h = 0.1 * jax.random.normal(
        k_bh, (NUM_HIDDEN, 1), dtype=jnp.float32)                     # (2, 1)

    result = rbm_forward(visible_example, weights_vh, biases_v, biases_h, k_u)
    result = jax.block_until_ready(result)

    assert result.shape == () and result.dtype == jnp.float32
    print("KERNEL_OK")
</pallas_src>

<mosaic_0001>
module attributes {stable_mosaic.version = 11 : i64} {
  func.func @rbm_kernel(%arg0: memref<8x128xf32, #tpu.memory_space<vmem>>, %arg1: memref<1x128xf32, #tpu.memory_space<vmem>>) attributes {dimension_semantics = [], scalar_prefetch = 0 : i64, scratch_operands = 0 : i64, tpu.core_type = #tpu.core_type<tc>} {
    %c0 = arith.constant 0 : index
    %c0_0 = arith.constant 0 : index
    %0 = vector.load %arg0[%c0, %c0_0] : memref<8x128xf32, #tpu.memory_space<vmem>>, vector<8x128xf32>
    %1 = vector.extract_strided_slice %0 {offsets = [0, 9], sizes = [1, 1], strides = [1, 1]} : vector<8x128xf32> to vector<1x1xf32>
    %2 = vector.extract_strided_slice %0 {offsets = [1, 9], sizes = [1, 1], strides = [1, 1]} : vector<8x128xf32> to vector<1x1xf32>
    %3 = vector.extract_strided_slice %0 {offsets = [2, 9], sizes = [1, 1], strides = [1, 1]} : vector<8x128xf32> to vector<1x1xf32>
    %4 = vector.extract_strided_slice %0 {offsets = [0, 0], sizes = [1, 128], strides = [1, 1]} : vector<8x128xf32> to vector<1x128xf32>
    %5 = vector.broadcast %1 : vector<1x1xf32> to vector<1x128xf32>
    %6 = arith.mulf %5, %4 : vector<1x128xf32>
    %7 = vector.extract_strided_slice %0 {offsets = [1, 0], sizes = [1, 128], strides = [1, 1]} : vector<8x128xf32> to vector<1x128xf32>
    %8 = vector.broadcast %2 : vector<1x1xf32> to vector<1x128xf32>
    %9 = arith.mulf %8, %7 : vector<1x128xf32>
    %10 = arith.addf %6, %9 : vector<1x128xf32>
    %11 = vector.extract_strided_slice %0 {offsets = [2, 0], sizes = [1, 128], strides = [1, 1]} : vector<8x128xf32> to vector<1x128xf32>
    %12 = vector.broadcast %3 : vector<1x1xf32> to vector<1x128xf32>
    %13 = arith.mulf %12, %11 : vector<1x128xf32>
    %14 = arith.addf %10, %13 : vector<1x128xf32>
    %15 = vector.extract_strided_slice %0 {offsets = [7, 0], sizes = [1, 128], strides = [1, 1]} : vector<8x128xf32> to vector<1x128xf32>
    %16 = arith.addf %15, %14 : vector<1x128xf32>
    %17 = arith.negf %16 : vector<1x128xf32>
    %18 = math.exp %17 : vector<1x128xf32>
    %cst = arith.constant 1.000000e+00 : f32
    %19 = vector.broadcast %cst : f32 to vector<1x128xf32>
    %20 = arith.addf %19, %18 : vector<1x128xf32>
    %21 = arith.divf %19, %20 : vector<1x128xf32>
    %22 = vector.extract_strided_slice %21 {offsets = [0, 0], sizes = [1, 1], strides = [1, 1]} : vector<1x128xf32> to vector<1x1xf32>
    %23 = vector.extract_strided_slice %0 {offsets = [3, 0], sizes = [1, 1], strides = [1, 1]} : vector<8x128xf32> to vector<1x1xf32>
    %24 = arith.cmpf ogt, %22, %23 : vector<1x1xf32>
    %25 = arith.extui %24 : vector<1x1xi1> to vector<1x1xi32>
    %26 = arith.sitofp %25 : vector<1x1xi32> to vector<1x1xf32>
    %27 = vector.extract_strided_slice %21 {offsets = [0, 1], sizes = [1, 1], strides = [1, 1]} : vector<1x128xf32> to vector<1x1xf32>
    %28 = vector.extract_strided_slice %0 {offsets = [3, 1], sizes = [1, 1], strides = [1, 1]} : vector<8x128xf32> to vector<1x1xf32>
    %29 = arith.cmpf ogt, %27, %28 : vector<1x1xf32>
    %30 = arith.extui %29 : vector<1x1xi1> to vector<1x1xi32>
    %31 = arith.sitofp %30 : vector<1x1xi32> to vector<1x1xf32>
    %32 = vector.extract_strided_slice %14 {offsets = [0, 0], sizes = [1, 1], strides = [1, 1]} : vector<1x128xf32> to vector<1x1xf32>
    %33 = arith.mulf %26, %32 : vector<1x1xf32>
    %34 = vector.extract_strided_slice %14 {offsets = [0, 1], sizes = [1, 1], strides = [1, 1]} : vector<1x128xf32> to vector<1x1xf32>
    %35 = arith.mulf %31, %34 : vector<1x1xf32>
    %36 = arith.addf %33, %35 : vector<1x1xf32>
    %37 = vector.extract_strided_slice %0 {offsets = [0, 8], sizes = [1, 1], strides = [1, 1]} : vector<8x128xf32> to vector<1x1xf32>
    %38 = arith.mulf %1, %37 : vector<1x1xf32>
    %39 = arith.addf %36, %38 : vector<1x1xf32>
    %40 = vector.extract_strided_slice %0 {offsets = [1, 8], sizes = [1, 1], strides = [1, 1]} : vector<8x128xf32> to vector<1x1xf32>
    %41 = arith.mulf %2, %40 : vector<1x1xf32>
    %42 = arith.addf %39, %41 : vector<1x1xf32>
    %43 = vector.extract_strided_slice %0 {offsets = [2, 8], sizes = [1, 1], strides = [1, 1]} : vector<8x128xf32> to vector<1x1xf32>
    %44 = arith.mulf %3, %43 : vector<1x1xf32>
    %45 = arith.addf %42, %44 : vector<1x1xf32>
    %46 = vector.extract_strided_slice %0 {offsets = [7, 0], sizes = [1, 1], strides = [1, 1]} : vector<8x128xf32> to vector<1x1xf32>
    %47 = arith.mulf %26, %46 : vector<1x1xf32>
    %48 = arith.addf %45, %47 : vector<1x1xf32>
    %49 = vector.extract_strided_slice %0 {offsets = [7, 1], sizes = [1, 1], strides = [1, 1]} : vector<8x128xf32> to vector<1x1xf32>
    %50 = arith.mulf %31, %49 : vector<1x1xf32>
    %51 = arith.addf %48, %50 : vector<1x1xf32>
    %52 = vector.extract_strided_slice %0 {offsets = [0, 0], sizes = [8, 1], strides = [1, 1]} : vector<8x128xf32> to vector<8x1xf32>
    %53 = vector.broadcast %26 : vector<1x1xf32> to vector<8x1xf32>
    %54 = arith.mulf %52, %53 : vector<8x1xf32>
    %55 = vector.extract_strided_slice %0 {offsets = [0, 1], sizes = [8, 1], strides = [1, 1]} : vector<8x128xf32> to vector<8x1xf32>
    %56 = vector.broadcast %31 : vector<1x1xf32> to vector<8x1xf32>
    %57 = arith.mulf %55, %56 : vector<8x1xf32>
    %58 = arith.addf %54, %57 : vector<8x1xf32>
    %59 = vector.extract_strided_slice %0 {offsets = [0, 8], sizes = [8, 1], strides = [1, 1]} : vector<8x128xf32> to vector<8x1xf32>
    %60 = arith.addf %59, %58 : vector<8x1xf32>
    %61 = arith.negf %60 : vector<8x1xf32>
    %62 = math.exp %61 : vector<8x1xf32>
    %cst_1 = arith.constant 1.000000e+00 : f32
    %63 = vector.broadcast %cst_1 : f32 to vector<8x1xf32>
    %64 = arith.addf %63, %62 : vector<8x1xf32>
    %65 = arith.divf %63, %64 : vector<8x1xf32>
    %66 = vector.extract_strided_slice %65 {offsets = [0, 0], sizes = [1, 1], strides = [1, 1]} : vector<8x1xf32> to vector<1x1xf32>
    %67 = vector.extract_strided_slice %0 {offsets = [0, 16], sizes = [1, 1], strides = [1, 1]} : vector<8x128xf32> to vector<1x1xf32>
    %68 = arith.cmpf ogt, %66, %67 : vector<1x1xf32>
    %69 = arith.extui %68 : vector<1x1xi1> to vector<1x1xi32>
    %70 = arith.sitofp %69 : vector<1x1xi32> to vector<1x1xf32>
    %71 = vector.extract_strided_slice %65 {offsets = [1, 0], sizes = [1, 1], strides = [1, 1]} : vector<8x1xf32> to vector<1x1xf32>
    %72 = vector.extract_strided_slice %0 {offsets = [1, 16], sizes = [1, 1], strides = [1, 1]} : vector<8x128xf32> to vector<1x1xf32>
    %73 = arith.cmpf ogt, %71, %72 : vector<1x1xf32>
    %74 = arith.extui %73 : vector<1x1xi1> to vector<1x1xi32>
    %75 = arith.sitofp %74 : vector<1x1xi32> to vector<1x1xf32>
    %76 = vector.extract_strided_slice %65 {offsets = [2, 0], sizes = [1, 1], strides = [1, 1]} : vector<8x1xf32> to vector<1x1xf32>
    %77 = vector.extract_strided_slice %0 {offsets = [2, 16], sizes = [1, 1], strides = [1, 1]} : vector<8x128xf32> to vector<1x1xf32>
    %78 = arith.cmpf ogt, %76, %77 : vector<1x1xf32>
    %79 = arith.extui %78 : vector<1x1xi1> to vector<1x1xi32>
    %80 = arith.sitofp %79 : vector<1x1xi32> to vector<1x1xf32>
    %81 = vector.extract_strided_slice %0 {offsets = [0, 0], sizes = [1, 128], strides = [1, 1]} : vector<8x128xf32> to vector<1x128xf32>
    %82 = vector.broadcast %70 : vector<1x1xf32> to vector<1x128xf32>
    %83 = arith.mulf %82, %81 : vector<1x128xf32>
    %84 = vector.extract_strided_slice %0 {offsets = [1, 0], sizes = [1, 128], strides = [1, 1]} : vector<8x128xf32> to vector<1x128xf32>
    %85 = vector.broadcast %75 : vector<1x1xf32> to vector<1x128xf32>
    %86 = arith.mulf %85, %84 : vector<1x128xf32>
    %87 = arith.addf %83, %86 : vector<1x128xf32>
    %88 = vector.extract_strided_slice %0 {offsets = [2, 0], sizes = [1, 128], strides = [1, 1]} : vector<8x128xf32> to vector<1x128xf32>
    %89 = vector.broadcast %80 : vector<1x1xf32> to vector<1x128xf32>
    %90 = arith.mulf %89, %88 : vector<1x128xf32>
    %91 = arith.addf %87, %90 : vector<1x128xf32>
    %92 = vector.extract_strided_slice %0 {offsets = [7, 0], sizes = [1, 128], strides = [1, 1]} : vector<8x128xf32> to vector<1x128xf32>
    %93 = arith.addf %92, %91 : vector<1x128xf32>
    %94 = arith.negf %93 : vector<1x128xf32>
    %95 = math.exp %94 : vector<1x128xf32>
    %cst_2 = arith.constant 1.000000e+00 : f32
    %96 = vector.broadcast %cst_2 : f32 to vector<1x128xf32>
    %97 = arith.addf %96, %95 : vector<1x128xf32>
    %98 = arith.divf %96, %97 : vector<1x128xf32>
    %99 = vector.extract_strided_slice %98 {offsets = [0, 0], sizes = [1, 1], strides = [1, 1]} : vector<1x128xf32> to vector<1x1xf32>
    %100 = vector.extract_strided_slice %0 {offsets = [4, 0], sizes = [1, 1], strides = [1, 1]} : vector<8x128xf32> to vector<1x1xf32>
    %101 = arith.cmpf ogt, %99, %100 : vector<1x1xf32>
    %102 = arith.extui %101 : vector<1x1xi1> to vector<1x1xi32>
    %103 = arith.sitofp %102 : vector<1x1xi32> to vector<1x1xf32>
    %104 = vector.extract_strided_slice %98 {offsets = [0, 1], sizes = [1, 1], strides = [1, 1]} : vector<1x128xf32> to vector<1x1xf32>
    %105 = vector.extract_strided_slice %0 {offsets = [4, 1], sizes = [1, 1], strides = [1, 1]} : vector<8x128xf32> to vector<1x1xf32>
    %106 = arith.cmpf ogt, %104, %105 : vector<1x1xf32>
    %107 = arith.extui %106 : vector<1x1xi1> to vector<1x1xi32>
    %108 = arith.sitofp %107 : vector<1x1xi32> to vector<1x1xf32>
    %109 = vector.extract_strided_slice %0 {offsets = [0, 0], sizes = [8, 1], strides = [1, 1]} : vector<8x128xf32> to vector<8x1xf32>
    %110 = vector.broadcast %103 : vector<1x1xf32> to vector<8x1xf32>
    %111 = arith.mulf %109, %110 : vector<8x1xf32>
    %112 = vector.extract_strided_slice %0 {offsets = [0, 1], sizes = [8, 1], strides = [1, 1]} : vector<8x128xf32> to vector<8x1xf32>
    %113 = vector.broadcast %108 : vector<1x1xf32> to vector<8x1xf32>
    %114 = arith.mulf %112, %113 : vector<8x1xf32>
    %115 = arith.addf %111, %114 : vector<8x1xf32>
    %116 = vector.extract_strided_slice %0 {offsets = [0, 8], sizes = [8, 1], strides = [1, 1]} : vector<8x128xf32> to vector<8x1xf32>
    %117 = arith.addf %116, %115 : vector<8x1xf32>
    %118 = arith.negf %117 : vector<8x1xf32>
    %119 = math.exp %118 : vector<8x1xf32>
    %cst_3 = arith.constant 1.000000e+00 : f32
    %120 = vector.broadcast %cst_3 : f32 to vector<8x1xf32>
    %121 = arith.addf %120, %119 : vector<8x1xf32>
    %122 = arith.divf %120, %121 : vector<8x1xf32>
    %123 = vector.extract_strided_slice %122 {offsets = [0, 0], sizes = [1, 1], strides = [1, 1]} : vector<8x1xf32> to vector<1x1xf32>
    %124 = vector.extract_strided_slice %0 {offsets = [0, 17], sizes = [1, 1], strides = [1, 1]} : vector<8x128xf32> to vector<1x1xf32>
    %125 = arith.cmpf ogt, %123, %124 : vector<1x1xf32>
    %126 = arith.extui %125 : vector<1x1xi1> to vector<1x1xi32>
    %127 = arith.sitofp %126 : vector<1x1xi32> to vector<1x1xf32>
    %128 = vector.extract_strided_slice %122 {offsets = [1, 0], sizes = [1, 1], strides = [1, 1]} : vector<8x1xf32> to vector<1x1xf32>
    %129 = vector.extract_strided_slice %0 {offsets = [1, 17], sizes = [1, 1], strides = [1, 1]} : vector<8x128xf32> to vector<1x1xf32>
    %130 = arith.cmpf ogt, %128, %129 : vector<1x1xf32>
    %131 = arith.extui %130 : vector<1x1xi1> to vector<1x1xi32>
    %132 = arith.sitofp %131 : vector<1x1xi32> to vector<1x1xf32>
    %133 = vector.extract_strided_slice %122 {offsets = [2, 0], sizes = [1, 1], strides = [1, 1]} : vector<8x1xf32> to vector<1x1xf32>
    %134 = vector.extract_strided_slice %0 {offsets = [2, 17], sizes = [1, 1], strides = [1, 1]} : vector<8x128xf32> to vector<1x1xf32>
    %135 = arith.cmpf ogt, %133, %134 : vector<1x1xf32>
    %136 = arith.extui %135 : vector<1x1xi1> to vector<1x1xi32>
    %137 = arith.sitofp %136 : vector<1x1xi32> to vector<1x1xf32>
    %138 = vector.extract_strided_slice %0 {offsets = [0, 0], sizes = [1, 128], strides = [1, 1]} : vector<8x128xf32> to vector<1x128xf32>
    %139 = vector.broadcast %127 : vector<1x1xf32> to vector<1x128xf32>
    %140 = arith.mulf %139, %138 : vector<1x128xf32>
    %141 = vector.extract_strided_slice %0 {offsets = [1, 0], sizes = [1, 128], strides = [1, 1]} : vector<8x128xf32> to vector<1x128xf32>
    %142 = vector.broadcast %132 : vector<1x1xf32> to vector<1x128xf32>
    %143 = arith.mulf %142, %141 : vector<1x128xf32>
    %144 = arith.addf %140, %143 : vector<1x128xf32>
    %145 = vector.extract_strided_slice %0 {offsets = [2, 0], sizes = [1, 128], strides = [1, 1]} : vector<8x128xf32> to vector<1x128xf32>
    %146 = vector.broadcast %137 : vector<1x1xf32> to vector<1x128xf32>
    %147 = arith.mulf %146, %145 : vector<1x128xf32>
    %148 = arith.addf %144, %147 : vector<1x128xf32>
    %149 = vector.extract_strided_slice %0 {offsets = [7, 0], sizes = [1, 128], strides = [1, 1]} : vector<8x128xf32> to vector<1x128xf32>
    %150 = arith.addf %149, %148 : vector<1x128xf32>
    %151 = arith.negf %150 : vector<1x128xf32>
    %152 = math.exp %151 : vector<1x128xf32>
    %cst_4 = arith.constant 1.000000e+00 : f32
    %153 = vector.broadcast %cst_4 : f32 to vector<1x128xf32>
    %154 = arith.addf %153, %152 : vector<1x128xf32>
    %155 = arith.divf %153, %154 : vector<1x128xf32>
    %156 = vector.extract_strided_slice %155 {offsets = [0, 0], sizes = [1, 1], strides = [1, 1]} : vector<1x128xf32> to vector<1x1xf32>
    %157 = vector.extract_strided_slice %0 {offsets = [5, 0], sizes = [1, 1], strides = [1, 1]} : vector<8x128xf32> to vector<1x1xf32>
    %158 = arith.cmpf ogt, %156, %157 : vector<1x1xf32>
    %159 = arith.extui %158 : vector<1x1xi1> to vector<1x1xi32>
    %160 = arith.sitofp %159 : vector<1x1xi32> to vector<1x1xf32>
    %161 = vector.extract_strided_slice %155 {offsets = [0, 1], sizes = [1, 1], strides = [1, 1]} : vector<1x128xf32> to vector<1x1xf32>
    %162 = vector.extract_strided_slice %0 {offsets = [5, 1], sizes = [1, 1], strides = [1, 1]} : vector<8x128xf32> to vector<1x1xf32>
    %163 = arith.cmpf ogt, %161, %162 : vector<1x1xf32>
    %164 = arith.extui %163 : vector<1x1xi1> to vector<1x1xi32>
    %165 = arith.sitofp %164 : vector<1x1xi32> to vector<1x1xf32>
    %166 = vector.extract_strided_slice %0 {offsets = [0, 0], sizes = [8, 1], strides = [1, 1]} : vector<8x128xf32> to vector<8x1xf32>
    %167 = vector.broadcast %160 : vector<1x1xf32> to vector<8x1xf32>
    %168 = arith.mulf %166, %167 : vector<8x1xf32>
    %169 = vector.extract_strided_slice %0 {offsets = [0, 1], sizes = [8, 1], strides = [1, 1]} : vector<8x128xf32> to vector<8x1xf32>
    %170 = vector.broadcast %165 : vector<1x1xf32> to vector<8x1xf32>
    %171 = arith.mulf %169, %170 : vector<8x1xf32>
    %172 = arith.addf %168, %171 : vector<8x1xf32>
    %173 = vector.extract_strided_slice %0 {offsets = [0, 8], sizes = [8, 1], strides = [1, 1]} : vector<8x128xf32> to vector<8x1xf32>
    %174 = arith.addf %173, %172 : vector<8x1xf32>
    %175 = arith.negf %174 : vector<8x1xf32>
    %176 = math.exp %175 : vector<8x1xf32>
    %cst_5 = arith.constant 1.000000e+00 : f32
    %177 = vector.broadcast %cst_5 : f32 to vector<8x1xf32>
    %178 = arith.addf %177, %176 : vector<8x1xf32>
    %179 = arith.divf %177, %178 : vector<8x1xf32>
    %180 = vector.extract_strided_slice %179 {offsets = [0, 0], sizes = [1, 1], strides = [1, 1]} : vector<8x1xf32> to vector<1x1xf32>
    %181 = vector.extract_strided_slice %0 {offsets = [0, 18], sizes = [1, 1], strides = [1, 1]} : vector<8x128xf32> to vector<1x1xf32>
    %182 = arith.cmpf ogt, %180, %181 : vector<1x1xf32>
    %183 = arith.extui %182 : vector<1x1xi1> to vector<1x1xi32>
    %184 = arith.sitofp %183 : vector<1x1xi32> to vector<1x1xf32>
    %185 = vector.extract_strided_slice %179 {offsets = [1, 0], sizes = [1, 1], strides = [1, 1]} : vector<8x1xf32> to vector<1x1xf32>
    %186 = vector.extract_strided_slice %0 {offsets = [1, 18], sizes = [1, 1], strides = [1, 1]} : vector<8x128xf32> to vector<1x1xf32>
    %187 = arith.cmpf ogt, %185, %186 : vector<1x1xf32>
    %188 = arith.extui %187 : vector<1x1xi1> to vector<1x1xi32>
    %189 = arith.sitofp %188 : vector<1x1xi32> to vector<1x1xf32>
    %190 = vector.extract_strided_slice %179 {offsets = [2, 0], sizes = [1, 1], strides = [1, 1]} : vector<8x1xf32> to vector<1x1xf32>
    %191 = vector.extract_strided_slice %0 {offsets = [2, 18], sizes = [1, 1], strides = [1, 1]} : vector<8x128xf32> to vector<1x1xf32>
    %192 = arith.cmpf ogt, %190, %191 : vector<1x1xf32>
    %193 = arith.extui %192 : vector<1x1xi1> to vector<1x1xi32>
    %194 = arith.sitofp %193 : vector<1x1xi32> to vector<1x1xf32>
    %195 = vector.extract_strided_slice %172 {offsets = [0, 0], sizes = [1, 1], strides = [1, 1]} : vector<8x1xf32> to vector<1x1xf32>
    %196 = arith.mulf %184, %195 : vector<1x1xf32>
    %197 = vector.extract_strided_slice %172 {offsets = [1, 0], sizes = [1, 1], strides = [1, 1]} : vector<8x1xf32> to vector<1x1xf32>
    %198 = arith.mulf %189, %197 : vector<1x1xf32>
    %199 = arith.addf %196, %198 : vector<1x1xf32>
    %200 = vector.extract_strided_slice %172 {offsets = [2, 0], sizes = [1, 1], strides = [1, 1]} : vector<8x1xf32> to vector<1x1xf32>
    %201 = arith.mulf %194, %200 : vector<1x1xf32>
    %202 = arith.addf %199, %201 : vector<1x1xf32>
    %203 = vector.extract_strided_slice %0 {offsets = [0, 8], sizes = [1, 1], strides = [1, 1]} : vector<8x128xf32> to vector<1x1xf32>
    %204 = arith.mulf %184, %203 : vector<1x1xf32>
    %205 = arith.addf %202, %204 : vector<1x1xf32>
    %206 = vector.extract_strided_slice %0 {offsets = [1, 8], sizes = [1, 1], strides = [1, 1]} : vector<8x128xf32> to vector<1x1xf32>
    %207 = arith.mulf %189, %206 : vector<1x1xf32>
    %208 = arith.addf %205, %207 : vector<1x1xf32>
    %209 = vector.extract_strided_slice %0 {offsets = [2, 8], sizes = [1, 1], strides = [1, 1]} : vector<8x128xf32> to vector<1x1xf32>
    %210 = arith.mulf %194, %209 : vector<1x1xf32>
    %211 = arith.addf %208, %210 : vector<1x1xf32>
    %212 = vector.extract_strided_slice %0 {offsets = [7, 0], sizes = [1, 1], strides = [1, 1]} : vector<8x128xf32> to vector<1x1xf32>
    %213 = arith.mulf %160, %212 : vector<1x1xf32>
    %214 = arith.addf %211, %213 : vector<1x1xf32>
    %215 = vector.extract_strided_slice %0 {offsets = [7, 1], sizes = [1, 1], strides = [1, 1]} : vector<8x128xf32> to vector<1x1xf32>
    %216 = arith.mulf %165, %215 : vector<1x1xf32>
    %217 = arith.addf %214, %216 : vector<1x1xf32>
    %218 = arith.subf %51, %217 : vector<1x1xf32>
    %219 = vector.shape_cast %218 : vector<1x1xf32> to vector<1x1xf32>
    %220 = vector.broadcast %219 : vector<1x1xf32> to vector<1x128xf32>
    %c0_6 = arith.constant 0 : index
    %c0_7 = arith.constant 0 : index
    %221 = vector.load %arg1[%c0_6, %c0_7] : memref<1x128xf32, #tpu.memory_space<vmem>>, vector<1x128xf32>
    tpu.vector_store %arg1[%c0_6, %c0_7], %220 {strides = array<i32>} : memref<1x128xf32, #tpu.memory_space<vmem>>, vector<1x128xf32>,
    return
  }
}

</mosaic_0001>

<bundles_post_ra>
// kernel: rbm_forward.3
= control target key start
LH: loop header
LB: loop body
LE: loop exit
PB: predicated region body
PF: predicated region fallthrough
CT: control target
= control target key end

     0   :  { %s494_s0 = inlined_call_operand.vmem [shape: f32[8,128], index: 0, kind: input, shape index: {}]   ;;  %s495_s1 = inlined_call_operand.hbm [shape: f32[1,128], index: 1, kind: output, shape index: {}]  }
   0x1   :  { %v435_v0 = vld [vmem:[%s494_s0] sm:$0xff] }
   0x2   :  { %6 = vsyncpa [#allocation3], 0  ;;  %v410_v1 = vmov 9   ;;  %v46_v20 = vrot.slane %v435_v0, 4  ;;  %v411_v24 = vmov 0.0   ;;  %s412_s0 = smov 127  }
   0x3   :  { %357 = vset.pattern.permute.xlu0 %v410_v1  ;;  %s413_s8 = smov 8   ;;  %s414_s9 = smov 120   ;;  %v415_v32 = vmov 8  }
   0x4   :  { %12 = vperm.xlu0 %357, %v435_v0   ;;  %358 = vset.pattern.permute.xlu2 %v415_v32  ;;  %s416_s10 = smov 119   ;;  %s417_s11 = smov 118  }
   0x5   :  { %s418_s12 = smov 7   ;;  %s419_s13 = smov 1  }
   0x6   :  { %s421_s14 = smov [#allocation2]   ;;  %s324_s18 = sshll.u32 %s495_s1, 4  ;;  %s325_s18 = int_to_ptr.hbm [resolvable:$true] %s324_s18 }
   0x7   :  { %s322_s15 = sshll.u32 %s421_s14, 4  ;;  %s323_s15 = int_to_ptr.vmem [resolvable:$true] %s322_s15 }
  0x76   :  { %v13_v2 = vpop.permute.xlu0 %12 }
  0x77   :  { %v15_v3 = vmul.f32 %v13_v2, %v435_v0 }
  0x79   :  { %v17_v4 = vrot.slane %v15_v3, 1  ;;  %v20_v6 = vrot.slane %v15_v3, 2 }
  0x7b   :  { %v19_v5 = vadd.f32 %v17_v4, %v15_v3  ;;  %v157_v4 = vrot.slane %v435_v0, 5 }
  0x7d   :  { %v22_v7 = vadd.f32 %v20_v6, %v19_v5 }
  0x7f   :  { %v24_v8 = vrot.slane %v22_v7, 1 }
  0x81   :  { %v26_v9 = vadd.f32 %v24_v8, %v435_v0 }
  0x83   :  { %v333_v10 = vmul.f32 -1.442695, %v26_v9 }
  0x85   :  { %360 = vpow2.f32 %v333_v10 }
  0x8b   :  { %v361_v11 = vpop.eup %360 }
  0x8c   :  { %v30_v12 = vadd.f32 1.0, %v361_v11 }
  0x8e   :  { %362 = vrcp.f32 %v30_v12  ;;  %v42_v16 = vand.u32 2147483648, %v30_v12  ;;  %v40_v18 = vand.u32 2147483647, %v30_v12  ;;  %vm36_vm1 = vweird.f32 %v30_v12 }
  0x90   :  { %v43_v21 = vor.u32 1.1754944e-38, %v42_v16  ;;  %vm41_vm3 = vcmp.eq.f32.partialorder %v40_v18, 8.507059e+37 }
  0x94   :  { %v363_v13 = vpop.eup %362 }
  0x95   :  { %v32_v14 = vmul.f32 %v363_v13, %v30_v12  ;;  %vm37_vm0 = vweird.f32 %v363_v13 }
  0x96   :  { %vm38_vm2 = vmor %vm36_vm1, %vm37_vm0 }
  0x97   :  { %v33_v15 = vsub.f32 1.0, %v32_v14 }
  0x99   :  { %v34_v17 = vmul.f32 %v363_v13, %v33_v15 }
  0x9b   :  { %v35_v19 = vadd.f32 %v363_v13, %v34_v17 }
  0x9d   :  { %v39_v22 = vsel %vm38_vm2, %v363_v13, %v35_v19 }
  0x9e   :  { %v44_v23 = vsel %vm41_vm3, %v43_v21, %v39_v22 }
  0x9f   :  { %vm48_vm4 = vcmp.gt.f32.partialorder %v44_v23, %v46_v20 }
  0xa0   :  { %v442_v25 = vsel %vm48_vm4, 1.0, %v411_v24 }
  0xa1   :  { %v84_v26 = vperm.slane %v442_v25, 7  ;;  %v446_v27 = vmul.f32 %v442_v25, %v24_v8 }
  0xa3   :  { %v85_v28 = vmul.f32 %v84_v26, %v435_v0 }
  0xa5   :  { %87 = vrot.lane.b32.xlu0 %v85_v28, %s412_s0 }
 0x117   :  { %v88_v29 = vpop.permute.xlu0 %87 }
 0x118   :  { %v90_v30 = vadd.f32 %v88_v29, %v85_v28 }
 0x11a   :  { %92 = vrot.lane.b32.xlu1 %v90_v30, %s413_s8 }
 0x122   :  { %115 = vrot.lane.b32.xlu1 %v435_v0, %s414_s9 }
 0x12a   :  { %193 = vrot.lane.b32.xlu1 %v435_v0, %s416_s10 }
 0x18c   :  { %v93_v31 = vpop.permute.xlu1 %92 }
 0x18d   :  { %v95_v33 = vadd.f32 %v93_v31, %v435_v0 }
 0x18f   :  { %v335_v34 = vmul.f32 -1.442695, %v95_v33 }
 0x191   :  { %364 = vpow2.f32 %v335_v34 }
 0x194   :  { %v116_v45 = vpop.permute.xlu1 %115 }
 0x197   :  { %v365_v35 = vpop.eup %364 }
 0x198   :  { %v99_v36 = vadd.f32 1.0, %v365_v35 }
 0x19a   :  { %366 = vrcp.f32 %v99_v36  ;;  %v111_v40 = vand.u32 2147483648, %v99_v36  ;;  %v109_v42 = vand.u32 2147483647, %v99_v36  ;;  %vm105_vm6 = vweird.f32 %v99_v36 }
 0x19c   :  { %v112_v44 = vor.u32 1.1754944e-38, %v111_v40  ;;  %vm110_vm8 = vcmp.eq.f32.partialorder %v109_v42, 8.507059e+37  ;;  %v194_v29 = vpop.permute.xlu1 %193 }
 0x1a0   :  { %v367_v37 = vpop.eup %366 }
 0x1a1   :  { %v101_v38 = vmul.f32 %v367_v37, %v99_v36  ;;  %vm106_vm5 = vweird.f32 %v367_v37 }
 0x1a2   :  { %vm107_vm7 = vmor %vm105_vm6, %vm106_vm5 }
 0x1a3   :  { %v102_v39 = vsub.f32 1.0, %v101_v38 }
 0x1a5   :  { %v103_v41 = vmul.f32 %v367_v37, %v102_v39 }
 0x1a7   :  { %v104_v43 = vadd.f32 %v367_v37, %v103_v41 }
 0x1a9   :  { %v108_v46 = vsel %vm107_vm7, %v367_v37, %v104_v43 }
 0x1aa   :  { %v113_v47 = vsel %vm110_vm8, %v112_v44, %v108_v46 }
 0x1ab   :  { %vm118_vm9 = vcmp.gt.f32.partialorder %v113_v47, %v116_v45 }
 0x1ac   :  { %v336_v48 = vsel %vm118_vm9, 1.0, %v411_v24 }
 0x1ad   :  { %123 = vperm.xlu2 %358, %v336_v48  }
 0x207   :  { %v124_v49 = vpop.permute.xlu2 %123 }
 0x208   :  { %v126_v50 = vmul.f32 %v124_v49, %v435_v0 }
 0x20a   :  { %v128_v51 = vrot.slane %v126_v50, 1  ;;  %v131_v53 = vrot.slane %v126_v50, 2 }
 0x20c   :  { %v130_v52 = vadd.f32 %v128_v51, %v126_v50  ;;  %v235_v51 = vrot.slane %v435_v0, 6 }
 0x20e   :  { %v133_v54 = vadd.f32 %v131_v53, %v130_v52 }
 0x210   :  { %v135_v55 = vrot.slane %v133_v54, 1 }
 0x212   :  { %v137_v56 = vadd.f32 %v135_v55, %v435_v0 }
 0x214   :  { %v337_v57 = vmul.f32 -1.442695, %v137_v56 }
 0x216   :  { %368 = vpow2.f32 %v337_v57 }
 0x21c   :  { %v369_v58 = vpop.eup %368 }
 0x21d   :  { %v141_v59 = vadd.f32 1.0, %v369_v58 }
 0x21f   :  { %370 = vrcp.f32 %v141_v59  ;;  %v153_v63 = vand.u32 2147483648, %v141_v59  ;;  %v151_v2 = vand.u32 2147483647, %v141_v59  ;;  %vm147_vm11 = vweird.f32 %v141_v59 }
 0x221   :  { %v154_v5 = vor.u32 1.1754944e-38, %v153_v63  ;;  %vm152_vm13 = vcmp.eq.f32.partialorder %v151_v2, 8.507059e+37 }
 0x225   :  { %v371_v60 = vpop.eup %370 }
 0x226   :  { %v143_v61 = vmul.f32 %v371_v60, %v141_v59  ;;  %vm148_vm10 = vweird.f32 %v371_v60 }
 0x227   :  { %vm149_vm12 = vmor %vm147_vm11, %vm148_vm10 }
 0x228   :  { %v144_v62 = vsub.f32 1.0, %v143_v61 }
 0x22a   :  { %v145_v1 = vmul.f32 %v371_v60, %v144_v62 }
 0x22c   :  { %v146_v3 = vadd.f32 %v371_v60, %v145_v1 }
 0x22e   :  { %v150_v6 = vsel %vm149_vm12, %v371_v60, %v146_v3 }
 0x22f   :  { %v155_v7 = vsel %vm152_vm13, %v154_v5, %v150_v6 }
 0x230   :  { %vm159_vm14 = vcmp.gt.f32.partialorder %v155_v7, %v157_v4  ;;  %v77_v4 = vmul.f32 %v442_v25, %v435_v0 }
 0x231   :  { %v338_v8 = vsel %vm159_vm14, 1.0, %v411_v24 }
 0x232   :  { %v162_v9 = vperm.slane %v338_v8, 7 }
 0x234   :  { %v163_v10 = vmul.f32 %v162_v9, %v435_v0 }
 0x236   :  { %165 = vrot.lane.b32.xlu2 %v163_v10, %s412_s0 }
 0x290   :  { %v166_v11 = vpop.permute.xlu2 %165 }
 0x291   :  { %v168_v12 = vadd.f32 %v166_v11, %v163_v10 }
 0x293   :  { %170 = vrot.lane.b32.xlu0 %v168_v12, %s413_s8 }
 0x305   :  { %v171_v13 = vpop.permute.xlu0 %170 }
 0x306   :  { %v173_v14 = vadd.f32 %v171_v13, %v435_v0 }
 0x308   :  { %v339_v15 = vmul.f32 -1.442695, %v173_v14 }
 0x30a   :  { %372 = vpow2.f32 %v339_v15 }
 0x310   :  { %v373_v16 = vpop.eup %372 }
 0x311   :  { %v177_v17 = vadd.f32 1.0, %v373_v16 }
 0x313   :  { %374 = vrcp.f32 %v177_v17  ;;  %v189_v21 = vand.u32 2147483648, %v177_v17  ;;  %v187_v23 = vand.u32 2147483647, %v177_v17  ;;  %vm183_vm0 = vweird.f32 %v177_v17 }
 0x315   :  { %v190_v28 = vor.u32 1.1754944e-38, %v189_v21  ;;  %vm188_vm2 = vcmp.eq.f32.partialorder %v187_v23, 8.507059e+37 }
 0x319   :  { %v375_v18 = vpop.eup %374 }
 0x31a   :  { %v179_v19 = vmul.f32 %v375_v18, %v177_v17  ;;  %vm184_vm15 = vweird.f32 %v375_v18 }
 0x31b   :  { %vm185_vm1 = vmor %vm183_vm0, %vm184_vm15 }
 0x31c   :  { %v180_v20 = vsub.f32 1.0, %v179_v19 }
 0x31e   :  { %v181_v22 = vmul.f32 %v375_v18, %v180_v20 }
 0x320   :  { %v182_v26 = vadd.f32 %v375_v18, %v181_v22 }
 0x322   :  { %v186_v30 = vsel %vm185_vm1, %v375_v18, %v182_v26 }
 0x323   :  { %v191_v31 = vsel %vm188_vm2, %v190_v28, %v186_v30 }
 0x324   :  { %vm196_vm3 = vcmp.gt.f32.partialorder %v191_v31, %v194_v29 }
 0x325   :  { %v340_v32 = vsel %vm196_vm3, 1.0, %v411_v24 }
 0x326   :  { %201 = vperm.xlu2 %358, %v340_v32  }
 0x32e   :  { %271 = vrot.lane.b32.xlu2 %v435_v0, %s417_s11 }
 0x380   :  { %v202_v33 = vpop.permute.xlu2 %201 }
 0x381   :  { %v204_v34 = vmul.f32 %v202_v33, %v435_v0 }
 0x383   :  { %v206_v35 = vrot.slane %v204_v34, 1  ;;  %v209_v37 = vrot.slane %v204_v34, 2 }
 0x385   :  { %v208_v36 = vadd.f32 %v206_v35, %v204_v34 }
 0x387   :  { %v211_v38 = vadd.f32 %v209_v37, %v208_v36 }
 0x388   :  { %v272_v18 = vpop.permute.xlu2 %271 }
 0x389   :  { %v213_v39 = vrot.slane %v211_v38, 1 }
 0x38b   :  { %v215_v40 = vadd.f32 %v213_v39, %v435_v0 }
 0x38d   :  { %v341_v41 = vmul.f32 -1.442695, %v215_v40 }
 0x38f   :  { %376 = vpow2.f32 %v341_v41 }
 0x395   :  { %v377_v42 = vpop.eup %376 }
 0x396   :  { %v219_v43 = vadd.f32 1.0, %v377_v42 }
 0x398   :  { %378 = vrcp.f32 %v219_v43  ;;  %v231_v47 = vand.u32 2147483648, %v219_v43  ;;  %v229_v49 = vand.u32 2147483647, %v219_v43  ;;  %vm225_vm5 = vweird.f32 %v219_v43 }
 0x39a   :  { %v232_v52 = vor.u32 1.1754944e-38, %v231_v47  ;;  %vm230_vm7 = vcmp.eq.f32.partialorder %v229_v49, 8.507059e+37 }
 0x39e   :  { %v379_v44 = vpop.eup %378 }
 0x39f   :  { %v221_v45 = vmul.f32 %v379_v44, %v219_v43  ;;  %vm226_vm4 = vweird.f32 %v379_v44 }
 0x3a0   :  { %vm227_vm6 = vmor %vm225_vm5, %vm226_vm4 }
 0x3a1   :  { %v222_v46 = vsub.f32 1.0, %v221_v45 }
 0x3a3   :  { %v223_v48 = vmul.f32 %v379_v44, %v222_v46 }
 0x3a5   :  { %v224_v50 = vadd.f32 %v379_v44, %v223_v48 }
 0x3a7   :  { %v228_v53 = vsel %vm227_vm6, %v379_v44, %v224_v50 }
 0x3a8   :  { %v233_v54 = vsel %vm230_vm7, %v232_v52, %v228_v53 }
 0x3a9   :  { %vm237_vm8 = vcmp.gt.f32.partialorder %v233_v54, %v235_v51 }
 0x3aa   :  { %v342_v55 = vsel %vm237_vm8, 1.0, %v411_v24 }
 0x3ab   :  { %v294_v56 = vmul.f32 %v342_v55, %v435_v0  ;;  %v240_v57 = vperm.slane %v342_v55, 7 }
 0x3ad   :  { %v296_v58 = vrot.slane %v294_v56, 7  ;;  %v241_v59 = vmul.f32 %v240_v57, %v435_v0 }
 0x3af   :  { %301 = vrot.lane.b32.xlu2 %v296_v58, %s418_s12  ;;  %243 = vrot.lane.b32.xlu0 %v241_v59, %s412_s0 }
 0x3b7   :  { %57 = vrot.lane.b32.xlu0 %v435_v0, %s419_s13 }
 0x3bf   :  { %53 = vrot.lane.b32.xlu0 %v446_v27, %s412_s0 }
 0x409   :  { %v302_v37 = vpop.permute.xlu2 %301 }
 0x421   :  { %v244_v60 = vpop.permute.xlu0 %243 }
 0x422   :  { %v246_v61 = vadd.f32 %v244_v60, %v241_v59 }
 0x424   :  { %248 = vrot.lane.b32.xlu1 %v246_v61, %s413_s8 }
 0x429   :  { %v58_v62 = vpop.permute.xlu0 %57 }
 0x42a   :  { %v60_v63 = vmul.f32 %v58_v62, %v435_v0 }
 0x42c   :  { %297 = vrot.lane.b32.xlu1 %v296_v58, %s413_s8  ;;  %v72_v1 = vrot.slane %v60_v63, 3  ;;  %v67_v2 = vrot.slane %v60_v63, 2  ;;  %v62_v3 = vrot.slane %v60_v63, 1 }
 0x42e   :  { %73 = vrot.lane.b32.xlu0 %v72_v1, %s416_s10  ;;  %68 = vrot.lane.b32.xlu2 %v67_v2, %s416_s10 }
 0x431   :  { %v54_v40 = vpop.permute.xlu0 %53 }
 0x432   :  { %v56_v42 = vadd.f32 %v54_v40, %v446_v27 }
 0x434   :  { %63 = vrot.lane.b32.xlu1 %v62_v3, %s416_s10 }
 0x43c   :  { %80 = vrot.lane.b32.xlu1 %v77_v4, %s412_s0 }
 0x488   :  { %v69_v43 = vpop.permute.xlu2 %68 }
 0x496   :  { %v249_v5 = vpop.permute.xlu1 %248 }
 0x497   :  { %v251_v6 = vadd.f32 %v249_v5, %v435_v0 }
 0x499   :  { %v343_v7 = vmul.f32 -1.442695, %v251_v6 }
 0x49b   :  { %380 = vpow2.f32 %v343_v7 }
 0x49e   :  { %v298_v35 = vpop.permute.xlu1 %297 }
 0x4a0   :  { %v74_v45 = vpop.permute.xlu0 %73 }
 0x4a1   :  { %v381_v8 = vpop.eup %380 }
 0x4a2   :  { %v255_v9 = vadd.f32 1.0, %v381_v8 }
 0x4a4   :  { %382 = vrcp.f32 %v255_v9  ;;  %v267_v13 = vand.u32 2147483648, %v255_v9  ;;  %v265_v15 = vand.u32 2147483647, %v255_v9  ;;  %vm261_vm10 = vweird.f32 %v255_v9 }
 0x4a6   :  { %v268_v25 = vor.u32 1.1754944e-38, %v267_v13  ;;  %vm266_vm12 = vcmp.eq.f32.partialorder %v265_v15, 8.507059e+37  ;;  %v64_v41 = vpop.permute.xlu1 %63 }
 0x4aa   :  { %v383_v10 = vpop.eup %382 }
 0x4ab   :  { %v257_v11 = vmul.f32 %v383_v10, %v255_v9  ;;  %vm262_vm9 = vweird.f32 %v383_v10 }
 0x4ac   :  { %vm263_vm11 = vmor %vm261_vm10, %vm262_vm9 }
 0x4ad   :  { %v258_v12 = vsub.f32 1.0, %v257_v11 }
 0x4ae   :  { %v81_v48 = vpop.permute.xlu1 %80 }
 0x4af   :  { %v259_v14 = vmul.f32 %v383_v10, %v258_v12 }
 0x4b1   :  { %v260_v16 = vadd.f32 %v383_v10, %v259_v14 }
 0x4b3   :  { %v264_v17 = vsel %vm263_vm11, %v383_v10, %v260_v16 }
 0x4b4   :  { %v269_v19 = vsel %vm266_vm12, %v268_v25, %v264_v17 }
 0x4b5   :  { %vm274_vm13 = vcmp.gt.f32.partialorder %v269_v19, %v272_v18 }
 0x4b6   :  { %v344_v20 = vsel %vm274_vm13, 1.0, %v411_v24  ;;  %v420_v24 = vmov 0  }
 0x4b7   :  { %v277_v21 = vmul.f32 %v344_v20, %v249_v5  ;;  %v285_v28 = vmul.f32 %v344_v20, %v435_v0  ;;  %359 = vset.pattern.permute.xlu0 %v420_v24  ;;  %v66_v0 = vadd.f32 %v64_v41, %v56_v42 }
 0x4b9   :  { %v279_v22 = vrot.slane %v277_v21, 1  ;;  %v282_v26 = vrot.slane %v277_v21, 2  ;;  %v288_v31 = vrot.slane %v285_v28, 1  ;;  %v291_v33 = vrot.slane %v285_v28, 2 }
 0x4ba   :  { %v71_v44 = vadd.f32 %v69_v43, %v66_v0 }
 0x4bb   :  { %v281_v23 = vadd.f32 %v279_v22, %v277_v21 }
 0x4bc   :  { %v76_v46 = vadd.f32 %v74_v45, %v71_v44 }
 0x4bd   :  { %v284_v29 = vadd.f32 %v282_v26, %v281_v23 }
 0x4be   :  { %v78_v47 = vadd.f32 %v77_v4, %v76_v46 }
 0x4bf   :  { %v286_v30 = vadd.f32 %v285_v28, %v284_v29 }
 0x4c0   :  { %v83_v49 = vadd.f32 %v81_v48, %v78_v47 }
 0x4c1   :  { %v290_v32 = vadd.f32 %v288_v31, %v286_v30 }
 0x4c3   :  { %v293_v34 = vadd.f32 %v291_v33, %v290_v32 }
 0x4c5   :  { %v300_v36 = vadd.f32 %v298_v35, %v293_v34 }
 0x4c7   :  { %v304_v38 = vadd.f32 %v302_v37, %v300_v36 }
 0x4c9   :  { %v306_v39 = vrot.slane %v304_v38, 1 }
 0x4cb   :  { %307 = vrot.lane.b32.xlu2 %v306_v39, %s414_s9 }
 0x525   :  { %v308_v50 = vpop.permute.xlu2 %307 }
 0x526   :  { %v310_v51 = vsub.f32 %v83_v49, %v308_v50 }
 0x528   :  { %313 = vperm.xlu0 %359, %v310_v51  }
 0x59a   :  { %v314_v27 = vpop.permute.xlu0 %313 }
 0x59b   :  { %316 = vst [vmem:[#allocation2 - $0x7] sm:$0x80] %v314_v27 }
 0x59c   :  { %327 = dma.vmem_to_hbm [thread:$0]  %s323_s15, 16, %s325_s18, [#allocation3]  }
 0x59d   :  { %408 = dma.done.wait [#allocation3], 16  }
 0x59e   :  { %409 = vsyncadd [#allocation3], 4294967280 }
 0x59f   :  { %332 = vsyncpa [#allocation3], 1 }

</bundles_post_ra>
